<compile_context>
chip_gen: v6e
topology: v6e:2x2x1
jax: 0.10.0
libtpu: 0.0.40
codegen_flags: <defaults>
</compile_context>

<pallas_src>
import functools

import jax
import jax.numpy as jnp
from jax.experimental import pallas as pl
from jax.experimental.pallas import tpu as pltpu


def _gap_kernel(x_ref, o_ref, acc_ref, *, inv_hw):
    j = pl.program_id(1)

    @pl.when(j == 0)
    def _():
        acc_ref[...] = jnp.zeros_like(acc_ref)

    # (1, C, TL) -> lane-axis reduction -> (1, C, 1), accumulated in f32.
    acc_ref[...] += jnp.sum(x_ref[...].astype(jnp.float32), axis=2, keepdims=True)

    @pl.when(j == pl.num_programs(1) - 1)
    def _():
        o_ref[...] = (acc_ref[...] * inv_hw).astype(o_ref.dtype)


def global_avg_pool2d(x, *, l_chunk_bytes=4 << 20):
    """Global average pool over spatial dims of an NCHW tensor -> (N, C, 1, 1)."""
    n, c, h, w = x.shape
    L = h * w
    x3 = x.reshape(n, c, L)                      # contiguous flatten, no copy

    itemsize = jnp.dtype(x.dtype).itemsize
    if c * L * itemsize <= l_chunk_bytes or L % 128 != 0:
        tl = L                                   # whole row fits / can't tile cleanly
    else:
        # largest multiple of 128 within the per-block VMEM budget that divides L
        tl = max(128, ((l_chunk_bytes // (c * itemsize)) // 128) * 128)
        while L % tl != 0:                       # L % 128 == 0 here -> terminates at 128
            tl -= 128
    num_l = L // tl

    kernel = functools.partial(_gap_kernel, inv_hw=1.0 / float(L))
    out = pl.pallas_call(
        kernel,
        out_shape=jax.ShapeDtypeStruct((n, c, 1), x.dtype),
        grid=(n, num_l),                         # batch parallel, H*W reduction last
        in_specs=[pl.BlockSpec((1, c, tl), lambda b, j: (b, 0, j))],
        out_specs=pl.BlockSpec((1, c, 1), lambda b, j: (b, 0, 0)),
        scratch_shapes=[pltpu.VMEM((1, c, 1), jnp.float32)],
        compiler_params=pltpu.CompilerParams(
            dimension_semantics=("parallel", "arbitrary")),
    )(x3)
    return out.reshape(n, c, 1, 1)


if __name__ == "__main__":
    key = jax.random.PRNGKey(0)
    N, C, H, W = 2, 4, 16, 16
    x = jax.random.normal(key, (N, C, H, W), jnp.float32)

    out = jax.block_until_ready(global_avg_pool2d(x))

    # Pure-JAX reference: same semantics as the PyTorch module.
    ref = jnp.mean(x, axis=(2, 3), keepdims=True)
    assert out.shape == (N, C, 1, 1)
    assert jnp.allclose(out, ref, atol=1e-5, rtol=1e-5), float(jnp.max(jnp.abs(out - ref)))
    print("KERNEL_OK")
</pallas_src>

<mosaic_0001>
module attributes {stable_mosaic.version = 11 : i64} {
  func.func @_gap_kernel(%arg0: i32, %arg1: i32, %arg2: memref<1x4x256xf32, #tpu.memory_space<vmem>>, %arg3: memref<1x4x1xf32, #tpu.memory_space<vmem>>, %arg4: memref<1x4x1xf32, #tpu.memory_space<vmem>>) attributes {dimension_semantics = [#tpu.dimension_semantics<parallel>, #tpu.dimension_semantics<arbitrary>], iteration_bounds = array<i64: 2, 1>, scalar_prefetch = 0 : i64, scratch_operands = 1 : i64, tpu.core_type = #tpu.core_type<tc>, window_params = [{transform_indices = @transform_0, window_bounds = array<i64: 1, 4, 256>}, {transform_indices = @transform_1, window_bounds = array<i64: 1, 4, 1>}]} {
    %c0_i32 = arith.constant 0 : i32
    %0 = arith.cmpi eq, %arg1, %c0_i32 : i32
    %1 = arith.extui %0 : i1 to i32
    %c0_i32_0 = arith.constant 0 : i32
    %2 = arith.cmpi ne, %1, %c0_i32_0 : i32
    scf.if %2 {
      %cst_11 = arith.constant 0.000000e+00 : f32
      %12 = vector.broadcast %cst_11 : f32 to vector<1x4x1xf32>
      %c0_12 = arith.constant 0 : index
      %c0_13 = arith.constant 0 : index
      %c0_14 = arith.constant 0 : index
      %13 = vector.load %arg4[%c0_12, %c0_13, %c0_14] : memref<1x4x1xf32, #tpu.memory_space<vmem>>, vector<1x4x1xf32>
      tpu.vector_store %arg4[%c0_12, %c0_13, %c0_14], %12 {strides = array<i32>} : memref<1x4x1xf32, #tpu.memory_space<vmem>>, vector<1x4x1xf32>,
    } else {
    }
    %c0 = arith.constant 0 : index
    %c0_1 = arith.constant 0 : index
    %c0_2 = arith.constant 0 : index
    %3 = vector.load %arg4[%c0, %c0_1, %c0_2] : memref<1x4x1xf32, #tpu.memory_space<vmem>>, vector<1x4x1xf32>
    %c0_3 = arith.constant 0 : index
    %c0_4 = arith.constant 0 : index
    %c0_5 = arith.constant 0 : index
    %4 = vector.load %arg2[%c0_3, %c0_4, %c0_5] : memref<1x4x256xf32, #tpu.memory_space<vmem>>, vector<1x4x256xf32>
    %cst = arith.constant dense<0.000000e+00> : vector<1x4xf32>
    %5 = vector.multi_reduction <add>, %4, %cst [2] : vector<1x4x256xf32> to vector<1x4xf32>
    %6 = vector.shape_cast %5 : vector<1x4xf32> to vector<1x4x1xf32>
    %7 = arith.addf %3, %6 : vector<1x4x1xf32>
    %c0_6 = arith.constant 0 : index
    %c0_7 = arith.constant 0 : index
    %c0_8 = arith.constant 0 : index
    %8 = vector.load %arg4[%c0_6, %c0_7, %c0_8] : memref<1x4x1xf32, #tpu.memory_space<vmem>>, vector<1x4x1xf32>
    tpu.vector_store %arg4[%c0_6, %c0_7, %c0_8], %7 {strides = array<i32>} : memref<1x4x1xf32, #tpu.memory_space<vmem>>, vector<1x4x1xf32>,
    %c0_i32_9 = arith.constant 0 : i32
    %9 = arith.cmpi eq, %arg1, %c0_i32_9 : i32
    %10 = arith.extui %9 : i1 to i32
    %c0_i32_10 = arith.constant 0 : i32
    %11 = arith.cmpi ne, %10, %c0_i32_10 : i32
    scf.if %11 {
      %c0_11 = arith.constant 0 : index
      %c0_12 = arith.constant 0 : index
      %c0_13 = arith.constant 0 : index
      %12 = vector.load %arg4[%c0_11, %c0_12, %c0_13] : memref<1x4x1xf32, #tpu.memory_space<vmem>>, vector<1x4x1xf32>
      %cst_14 = arith.constant 3.906250e-03 : f32
      %13 = vector.broadcast %cst_14 : f32 to vector<1x4x1xf32>
      %14 = arith.mulf %12, %13 : vector<1x4x1xf32>
      %c0_15 = arith.constant 0 : index
      %c0_16 = arith.constant 0 : index
      %c0_17 = arith.constant 0 : index
      %15 = vector.load %arg3[%c0_15, %c0_16, %c0_17] : memref<1x4x1xf32, #tpu.memory_space<vmem>>, vector<1x4x1xf32>
      tpu.vector_store %arg3[%c0_15, %c0_16, %c0_17], %14 {strides = array<i32>} : memref<1x4x1xf32, #tpu.memory_space<vmem>>, vector<1x4x1xf32>,
    } else {
    }
    return
  }
  func.func @transform_0(%arg0: i32, %arg1: i32) -> (i32, i32, i32) {
    %c0_i32 = arith.constant 0 : i32
    %c0_i32_0 = arith.constant 0 : i32
    return %arg0, %c0_i32, %arg1 : i32, i32, i32
  }
  func.func @transform_1(%arg0: i32, %arg1: i32) -> (i32, i32, i32) {
    %c0_i32 = arith.constant 0 : i32
    %c0_i32_0 = arith.constant 0 : i32
    %c0_i32_1 = arith.constant 0 : i32
    return %arg0, %c0_i32, %c0_i32_0 : i32, i32, i32
  }
}

</mosaic_0001>

<bundles_post_ra>
// kernel: tpu_custom_call.1
= control target key start
LH: loop header
LB: loop body
LE: loop exit
PB: predicated region body
PF: predicated region fallthrough
CT: control target
= control target key end

     0   :  { %6 = vsyncpa [#allocation4], 0  ;;  %s517_s0 = inlined_call_operand.hbm [shape: f32[2,4,256], index: 0, kind: input, shape index: {}]   ;;  %s518_s1 = inlined_call_operand.vmem [shape: f32[2,4,1], index: 1, kind: output, shape index: {}]  }
   0x1   :  { %8 = vsyncpa [#allocation4 + $0x1], 0  ;;  %s414_s6 = smov 0   ;;  %s416_s7 = smov 0  }
   0x2   :  { %s418_s8 = smov 0   ;;  %s420_s9 = smov 0  }
   0x3   :  { %s422_s10 = smov 0   ;;  %s424_s11 = smov 0  }
   0x4 LB: > { %s252_s12 = sadd.s32 4294967295, %s400_s11   ;;  %s26_s13 = sadd.s32 1, %s396_s10  ;;  %s400_s11 = sphi %s424_s11, %s14_s11   ;;  %s396_s10 = sphi %s422_s10, %s526_s10   ;;  %s392_s9 = sphi %s420_s9, %s525_s9   ;;  %s388_s8 = sphi %s418_s8, %s524_s8   ;;  %s384_s7 = sphi %s416_s7, %s523_s7   ;;  %s380_s6 = sphi %s414_s6, %s522_s6  }
   0x5   : > { %p28_p0 = scmp.ge.s32.totalorder %s26_s13, 2  ;;  %s35_s14 = sadd.s32 1, %s388_s8 }
   0x6   : > { %p42_p1 = scmp.ne.s32.totalorder %s388_s8, %s384_s7  ;;  %p43_p2 = scmp.eq.s32.totalorder %s400_s11, 0 }
   0x7   : > { %s528_s13 = smov (%p28_p0, %s26_s13), 0  ;;  %p48_p4 = scmp.ne.s32.totalorder %s384_s7, %s380_s6 }
   0x8   : > { %p450_p3 = por %p43_p2, %p42_p1  ;;  %s30_s16 = ssub.s32 %s396_s10, %s528_s13 }
   0x9   : > { %p49_p5 = scmp.eq.s32.totalorder %s252_s12, 0  ;;  %p33_p6 = scmp.eq.s32.totalorder %s30_s16, 0 }
   0xa   : > { %p271_p8 = scmp.lt.s32.totalorder %s400_s11, 2  ;;  %s98_s19 = sand.u32 1, %s388_s8  }
   0xb   : > { %p457_p7 = por %p49_p5, %p48_p4  ;;  %s264_s20 = sshll.u32 %s396_s10, 7 }
   0xc   : > { %s463_s18 = scalar_select %p33_p6, %s388_s8, %s35_s14  }
   0xd   : > { %s256_s21 = sshll.u32 %s98_s19, 3  ;;  %s110_s24 = scalar_lea.hbm %s517_s0, %s264_s20 }
   0xe   : > { %s102_s25 = scalar_lea.vmem [#allocation3], %s256_s21  ;;  %p472_p9 = pnand %p271_p8, %p450_p3 }
   0xf   : > { %s112_s26 = sshll.u32 %s102_s25, 4  ;;  %p259_p10 = scmp.ge.s32.totalorder %s400_s11, 1  ;;  %s113_s26 = int_to_ptr.vmem [resolvable:$true] %s112_s26 }
  0x10   : > { %p117_p11 = scmp.lt.s32.totalorder %s400_s11, 3  ;;  %s99_s28 = scalar_lea.sflag [#allocation4], %s98_s19 }
  0x11   : > { %p324_p12 = pneg %p472_p9  ;;  %s335_s29 = scalar_lea.vmem %s113_s26, 128 }
  0x12   : > { %p336_p13 = scmp.ne.s32.totalorder %s113_s26, %s335_s29  ;;  %s402_s30 = smov [#allocation3]  }
  0x13   : > { %s340_s2 = sshll.u32 %s402_s30, 4  ;;  %s341_s2 = int_to_ptr.vmem [resolvable:$false] %s340_s2 }
  0x14   : > { %p338_p0 = pnand %p336_p13, %p324_p12  ;;  %s342_s3 = scalar_lea.vmem %s341_s2, 256 }
  0x15   : > { %p343_p2 = scmp.lt.s32.totalorder %s113_s26, %s341_s2  ;;  %p344_p3 = scmp.lt.s32.totalorder %s342_s3, %s335_s29 }
  0x16   : > { %p339_p1 = pneg %p338_p0 }
  0x17   : > { %p345_p4 = por %p344_p3, %p343_p2 }
  0x19   : > { %p346_p5 = pnand %p345_p4, %p339_p1 }
  0x1b   : > { %349 = shalt.err (!%p346_p5)
}
  0x1c   : > { %270 = dma.hbm_to_vmem [thread:$0]  (!%p472_p9), %s110_s24, 128, %s113_s26, %s99_s28  }
  0x1d   : > { %p118_p6 = pnand %p259_p10, %p117_p11 }
  0x1e   : > { %s123_s4 = sand.u32 (!%p118_p6), 1, %s384_s7  }
  0x1f   : > { %121 = sbr.rel (%p118_p6) target bundleno = 194 (0xc2), region = 24  ;;  %s260_s5 = sshll.u32 (!%p118_p6), %s123_s4, 3 }
  0x20   : > { %s124_s6 = scalar_lea.sflag (!%p118_p6), [#allocation4], %s123_s4  ;;  %s127_s12 = scalar_lea.vmem (!%p118_p6), [#allocation3], %s260_s5 }
  0x24   : > { %375 = dma.done.wait (%p457_p7), %s124_s6, 128  }
  0x25   : > { %377 = vsyncadd (%p457_p7), %s124_s6, 4294967168  ;;  %vm154_vm0 = vcmask 3072   ;;  %v403_v0 = vmov 0.0   ;;  %vm161_vm1 = vcmask 1043456   ;;  %v157_v1 = vld [vmem:[%s127_s12] sm:$0xff]  ;;  %p146_p8 = scmp.lt.s32.totalorder %s392_s9, 1 }
  0x26   : > { %155 = vst.msk [vmem:[#allocation2] sm:$0xf] %vm154_vm0, %v403_v0  ;;  %v159_v2 = vcombine.high %v157_v1, %v157_v1  ;;  %v162_v3 = vsel %vm161_vm1, %v157_v1, 0.0 }
  0x27   : > { %s530_s9 = smov (!%p146_p8, %s392_s9), 1 }
  0x28   : > { %v163_v4 = vsel %vm161_vm1, %v159_v2, 0.0  ;;  %s261_s14 = sshll.u32 %s530_s9, 2 }
  0x29   : > { %v164_v5 = vadd.f32 %v163_v4, %v162_v3  ;;  %s149_s17 = scalar_lea.vmem %s518_s1, %s261_s14 }
  0x2b   : > { %165 = vadd.xlane.f32.xlu0 %v164_v5 }
  0x2d   : > { %v156_v6 = vld [vmem:[#allocation2] sm:$0xf] }
  0xb4   : > { %v166_v7 = vpop.xlane.xlu0 %165 }
  0xb5   : > { %v167_v8 = vadd.f32 %v166_v7, %v156_v6 }
  0xb7   : > { %169 = vst.msk [vmem:[#allocation2] sm:$0xf] %vm154_vm0, %v167_v8 }
  0xbe   : > { %v173_v9 = vld [vmem:[#allocation2] sm:$0xf] }
  0xbf   : > { %v174_v10 = vmul.f32 0.00390625, %v173_v9 }
  0xc1   : > { %175 = vst.msk [vmem:[%s149_s17] sm:$0xf] %vm154_vm0, %v174_v10 }
  0xc2 PF: > { %s14_s11 = sadd.s32 1, %s400_s11   ;;  %s522_s6 = smov %s384_s7 }
  0xc3   : > { %p11_p7 = scmp.ge.s32.totalorder %s14_s11, 4   ;;  %s523_s7 = smov %s388_s8 }
  0xc4   : > { %s524_s8 = smov %s463_s18  ;;  %s525_s9 = smov %s396_s10 }
  0xc5   : > { %s526_s10 = smov %s528_s13  ;;  %13 = sbr.rel (!%p11_p7) target bundleno = 4 (0x4), region = 72 }
  0xca   :  { %195 = vsyncpa [#allocation4], 1 }
  0xcb   :  { %197 = vsyncpa [#allocation4 + $0x1], 1 }

</bundles_post_ra>
